<compile_context>
chip_gen: v5e
topology: v5e:2x2
jax: 0.10.0
libtpu: 0.0.40
codegen_flags: <defaults>
</compile_context>

<pallas_src>
import functools
import math

import jax
import jax.numpy as jnp
from jax import lax
from jax.experimental import pallas as pl
from jax.experimental.pallas import tpu as pltpu

_MASK = -1e9  # masked-logit value (torch-style masked softmax: fully-masked row -> uniform)


@functools.lru_cache(maxsize=1)
def _vmem_limit_bytes():
    """Generation-dependent scoped-VMEM limit (~96 MiB v5e/v6e, ~48 MiB v7x)."""
    try:
        cap = getattr(pltpu.get_tpu_info(), "vmem_capacity_bytes", None)
        if cap:
            return int(min(cap * 3 // 4, 100 * 1024 * 1024))
    except Exception:
        pass
    return 64 * 1024 * 1024


def _pick_tile(n, target, mult):
    """Largest multiple of `mult` that divides n and is <= target; fall back to n."""
    if n <= target:
        return n
    t = (target // mult) * mult
    while t >= mult:
        if n % t == 0:
            return t
        t -= mult
    return n


# ----------------------------------------------------------------------------
# Kernel 1: fused projection Wh = h @ W_m for all metapaths (h loaded once/tile)
# ----------------------------------------------------------------------------
def _gat_project_kernel(h_ref, w_ref, wh_ref):
    h = h_ref[...].astype(jnp.bfloat16)                        # (TN, in)
    num_meta = w_ref.shape[0]
    for m in range(num_meta):                                  # static unroll, M small
        wh_ref[m] = jnp.dot(h, w_ref[m],
                            preferred_element_type=jnp.float32).astype(wh_ref.dtype)


# ----------------------------------------------------------------------------
# Kernel 2: masked attention + aggregation, flash-style tiling over (query, key)
# ----------------------------------------------------------------------------
def _gat_attention_kernel(whq_ref, whk_ref, asrc_ref, adst_ref, adj_ref, o_ref,
                          m_sc, l_sc, acc_sc, *, alpha, num_heads, hid):
    k_id = pl.program_id(2)

    @pl.when(k_id == 0)
    def _():
        m_sc[...] = jnp.full_like(m_sc, _MASK)
        l_sc[...] = jnp.zeros_like(l_sc)
        acc_sc[...] = jnp.zeros_like(acc_sc)

    whq = whq_ref[0]                                           # (TQ, D)  bf16
    whk = whk_ref[0]                                           # (TK, D)  bf16
    a_src = asrc_ref[0]                                        # (D, H)   bf16 block-diag
    a_dst = adst_ref[0]                                        # (D, H)   bf16 block-diag
    mask = adj_ref[0] != 0                                     # (TQ, TK) int8 cmp, hoisted

    # Per-head logit pieces, recomputed per tile (tiny bf16 MXU matmuls; no HBM
    # intermediates, no transposes, native column/row layouts).
    e_src = jnp.dot(whq, a_src, preferred_element_type=jnp.float32)            # (TQ, H)
    e_dst = lax.dot_general(a_dst, whk, (((0,), (1,)), ((), ())),
                            preferred_element_type=jnp.float32)                # (H, TK)

    for hd in range(num_heads):                                # static unroll, H small
        e = e_src[:, hd:hd + 1] + e_dst[hd:hd + 1, :]          # (TQ, TK) additive logits
        e = jnp.where(e > 0.0, e, e * alpha)                   # LeakyReLU(alpha)
        e = jnp.where(mask, e, _MASK)                          # mask non-edges

        m_prev = m_sc[:, hd:hd + 1]                            # (TQ, 1)
        m_new = jnp.maximum(m_prev, jnp.max(e, axis=-1, keepdims=True))
        scale = jnp.exp(m_prev - m_new)                        # online-softmax rescale
        p = jnp.exp(e - m_new)                                 # (TQ, TK)
        l_sc[:, hd:hd + 1] = scale * l_sc[:, hd:hd + 1] + jnp.sum(
            p, axis=-1, keepdims=True)
        acc_sc[:, hd * hid:(hd + 1) * hid] = (
            scale * acc_sc[:, hd * hid:(hd + 1) * hid]
            + jnp.dot(p.astype(jnp.bfloat16), whk[:, hd * hid:(hd + 1) * hid],
                      preferred_element_type=jnp.float32))
        m_sc[:, hd:hd + 1] = m_new

    @pl.when(k_id == pl.num_programs(2) - 1)
    def _():
        inv = pl.reciprocal(jnp.maximum(l_sc[...], 1e-30), approx=True)  # (TQ, H) EUP
        if num_heads == 1:
            out = acc_sc[...] * inv
        else:
            cols = [acc_sc[:, hd * hid:(hd + 1) * hid] * inv[:, hd:hd + 1]
                    for hd in range(num_heads)]
            out = jnp.concatenate(cols, axis=-1)
        # ELU; clamp before exp so the untaken branch never produces inf.
        out = jnp.where(out > 0.0, out, jnp.exp(jnp.minimum(out, 0.0)) - 1.0)
        o_ref[0] = out.astype(o_ref.dtype)                     # lane-dense (TQ, D) bf16


def gat_layers(h, adj, W, A_src, A_dst, *, alpha):
    """h: (N,in) f32, adj: (M,N,N) int8, W: (M,in,D) bf16, A_*: (M,D,H) bf16 block-diag.
    Returns per-metapath embeddings (M, N, D) bf16."""
    M, N, _ = adj.shape
    in_dim = h.shape[1]
    D = W.shape[2]
    H = A_src.shape[2]
    hid = D // H
    vmem = _vmem_limit_bytes()

    tn = _pick_tile(N, 256, 32)
    wh = pl.pallas_call(
        _gat_project_kernel,
        out_shape=jax.ShapeDtypeStruct((M, N, D), jnp.bfloat16),
        grid_spec=pltpu.PrefetchScalarGridSpec(
            num_scalar_prefetch=0,
            grid=(N // tn,),
            in_specs=[
                pl.BlockSpec((tn, in_dim), lambda n: (n, 0)),
                pl.BlockSpec((M, in_dim, D), lambda n: (0, 0, 0)),
            ],
            out_specs=pl.BlockSpec((M, tn, D), lambda n: (0, n, 0))),
        compiler_params=pltpu.CompilerParams(
            dimension_semantics=("parallel",),
            vmem_limit_bytes=vmem),
    )(h, W)

    tq = _pick_tile(N, 256, 32)      # query tile: multiple of 32 (int8 adj sublanes)
    tk = _pick_tile(N, 512, 128)     # key tile:   multiple of 128 (lane dim)
    kernel = functools.partial(_gat_attention_kernel, alpha=alpha,
                               num_heads=H, hid=hid)
    return pl.pallas_call(
        kernel,
        out_shape=jax.ShapeDtypeStruct((M, N, D), jnp.bfloat16),
        grid_spec=pltpu.PrefetchScalarGridSpec(
            num_scalar_prefetch=0,
            grid=(M, N // tq, N // tk),
            in_specs=[
                pl.BlockSpec((1, tq, D), lambda m, q, k: (m, q, 0)),   # wh (query rows)
                pl.BlockSpec((1, tk, D), lambda m, q, k: (m, k, 0)),   # wh (key rows)
                pl.BlockSpec((1, D, H), lambda m, q, k: (m, 0, 0)),    # a_src
                pl.BlockSpec((1, D, H), lambda m, q, k: (m, 0, 0)),    # a_dst
                pl.BlockSpec((1, tq, tk), lambda m, q, k: (m, q, k)),  # adjacency int8
            ],
            out_specs=pl.BlockSpec((1, tq, D), lambda m, q, k: (m, q, 0)),
            scratch_shapes=[pltpu.VMEM((tq, H), jnp.float32),   # running max
                            pltpu.VMEM((tq, H), jnp.float32),   # running denom
                            pltpu.VMEM((tq, D), jnp.float32)]), # running accum
        compiler_params=pltpu.CompilerParams(
            dimension_semantics=("parallel", "parallel", "arbitrary"),
            vmem_limit_bytes=vmem),
    )(wh, wh, A_src, A_dst, adj)


# ----------------------------------------------------------------------------
# Kernel 3: semantic-attention scores (pass 1, N-tiled reduction -> beta (1, M))
# ----------------------------------------------------------------------------
def _sem_scores_kernel(z_ref, w1_ref, b1_ref, w2_ref, beta_ref, *, n_total):
    n_id = pl.program_id(0)

    @pl.when(n_id == 0)
    def _():
        beta_ref[...] = jnp.zeros_like(beta_ref)

    w1 = w1_ref[...]                                           # (D, Hsem) bf16
    b1 = b1_ref[...]                                           # (1, Hsem) f32
    w2 = w2_ref[...]                                           # (1, Hsem) f32
    num_meta = z_ref.shape[0]
    for m in range(num_meta):                                  # static unroll, M small
        s = jnp.tanh(jnp.dot(z_ref[m], w1,
                             preferred_element_type=jnp.float32) + b1)  # (TS, Hsem)
        sw = s * w2
        part = jnp.sum(jnp.sum(sw, axis=1, keepdims=True), axis=0, keepdims=True)  # (1,1)
        beta_ref[:, m:m + 1] += part

    @pl.when(n_id == pl.num_programs(0) - 1)
    def _():
        w = beta_ref[...] * (1.0 / n_total)                    # mean over nodes
        w = w - jnp.max(w, axis=1, keepdims=True)              # softmax over metapaths
        e = jnp.exp(w)
        beta_ref[...] = e * pl.reciprocal(jnp.sum(e, axis=1, keepdims=True),
                                          approx=True)


# ----------------------------------------------------------------------------
# Kernel 4: semantic-attention combine (pass 2, N-tiled beta-weighted sum)
# ----------------------------------------------------------------------------
def _sem_combine_kernel(beta_ref, z_ref, o_ref):
    beta = beta_ref[...]                                       # (1, M) f32
    num_meta = z_ref.shape[0]
    acc = beta[0:1, 0:1] * z_ref[0].astype(jnp.float32)        # (TS, D) f32 accumulation
    for m in range(1, num_meta):
        acc = acc + beta[0:1, m:m + 1] * z_ref[m].astype(jnp.float32)
    o_ref[...] = acc.astype(o_ref.dtype)


def semantic_attention(z, w1, b1, w2):
    """z: (M,N,D) bf16, w1: (D,Hsem) bf16, b1: (1,Hsem) f32, w2: (1,Hsem) f32 -> (N,D) f32."""
    M, N, D = z.shape
    Hsem = w1.shape[1]
    vmem = _vmem_limit_bytes()
    ts = _pick_tile(N, 512, 32)

    scores_kernel = functools.partial(_sem_scores_kernel, n_total=N)
    beta = pl.pallas_call(
        scores_kernel,
        out_shape=jax.ShapeDtypeStruct((1, M), jnp.float32),
        grid_spec=pltpu.PrefetchScalarGridSpec(
            num_scalar_prefetch=0,
            grid=(N // ts,),
            in_specs=[
                pl.BlockSpec((M, ts, D), lambda n: (0, n, 0)),
                pl.BlockSpec((D, Hsem), lambda n: (0, 0)),
                pl.BlockSpec((1, Hsem), lambda n: (0, 0)),
                pl.BlockSpec((1, Hsem), lambda n: (0, 0)),
            ],
            out_specs=pl.BlockSpec((1, M), lambda n: (0, 0))),
        compiler_params=pltpu.CompilerParams(
            dimension_semantics=("arbitrary",),
            vmem_limit_bytes=vmem),
    )(z, w1, b1, w2)

    return pl.pallas_call(
        _sem_combine_kernel,
        out_shape=jax.ShapeDtypeStruct((N, D), jnp.float32),
        grid_spec=pltpu.PrefetchScalarGridSpec(
            num_scalar_prefetch=0,
            grid=(N // ts,),
            in_specs=[
                pl.BlockSpec((1, M), lambda n: (0, 0)),
                pl.BlockSpec((M, ts, D), lambda n: (0, n, 0)),
            ],
            out_specs=pl.BlockSpec((ts, D), lambda n: (n, 0))),
        compiler_params=pltpu.CompilerParams(
            dimension_semantics=("parallel",),
            vmem_limit_bytes=vmem),
    )(beta, z)


# ----------------------------------------------------------------------------
# Parameter init + HAN model (single HANLayer, num_heads = 1; see fidelity notes)
# ----------------------------------------------------------------------------
def _block_diag_heads(a):
    """a: (M, H, hid) per-head attention vectors -> (M, H*hid, H) block-diagonal."""
    M, H, hid = a.shape
    eye = jnp.eye(H, dtype=a.dtype)                            # (H, H)
    blk = a[:, :, :, None] * eye[None, :, None, :]             # (M, H, hid, H)
    return blk.reshape(M, H * hid, H)


def init_han_params(key, *, num_meta_paths, in_size, hid_size, num_heads,
                    sem_hidden, relation_dim, num_relations):
    ks = jax.random.split(key, 8)

    def xav(k, shape, fan_in, fan_out, gain=1.414):
        bound = gain * math.sqrt(6.0 / (fan_in + fan_out))
        return jax.random.uniform(k, shape, jnp.float32, -bound, bound)

    D = hid_size * num_heads
    W_heads = xav(ks[0], (num_meta_paths, num_heads, in_size, hid_size),
                  in_size, hid_size)
    a_src = xav(ks[1], (num_meta_paths, num_heads, hid_size), 2 * hid_size, 1)
    a_dst = xav(ks[2], (num_meta_paths, num_heads, hid_size), 2 * hid_size, 1)
    params = {
        # fused-head layout (in, H*hid) per metapath, pre-cast to bf16 (halves weight DMA)
        "gat_W": jnp.transpose(W_heads, (0, 2, 1, 3)).reshape(
            num_meta_paths, in_size, D).astype(jnp.bfloat16),
        # block-diagonal so per-head logits come from a single matmul; bf16 for the MXU
        "A_src": _block_diag_heads(a_src).astype(jnp.bfloat16),
        "A_dst": _block_diag_heads(a_dst).astype(jnp.bfloat16),
        "sem_w1": xav(ks[3], (D, sem_hidden), D, sem_hidden,
                      gain=1.0).astype(jnp.bfloat16),
        "sem_b1": jnp.zeros((1, sem_hidden), jnp.float32),
        "sem_w2": xav(ks[4], (1, sem_hidden), sem_hidden, 1, gain=1.0),   # row layout
        # HAN.__init__ extras (not used by forward):
        "W_rel": xav(ks[5], (relation_dim, D), relation_dim, D),
        "relation_embed": jax.random.normal(
            ks[6], (num_relations, relation_dim), jnp.float32),
    }
    # init-time computation from HAN.__init__ (plain JAX glue):
    params["out_relation_1"] = params["relation_embed"] @ params["W_rel"]
    return params


@functools.partial(jax.jit, static_argnames=("alpha",))
def han_forward(h, adj, params, *, alpha=0.2):
    # single HANLayer: per-metapath GAT -> stack -> semantic attention
    sem_emb = gat_layers(h, adj, params["gat_W"], params["A_src"],
                         params["A_dst"], alpha=alpha)          # (M, N, D) bf16
    out = semantic_attention(sem_emb, params["sem_w1"], params["sem_b1"],
                             params["sem_w2"])                  # (N, D) f32
    return out


if __name__ == "__main__":
    key = jax.random.PRNGKey(0)

    # small, module-consistent shapes
    num_meta_paths = 2     # M
    num_nodes = 16         # N
    in_size = 16           # entity_embedd
    hid_size = 32          # hidden_size
    num_heads = 1          # H (keeps the single-HANLayer path of HAN.__init__)
    sem_hidden = 128       # SemanticAttention default hidden_size
    relation_dim = 8
    num_relations = 4
    alpha = 0.2

    kp, kh, ka = jax.random.split(key, 3)
    params = init_han_params(
        kp, num_meta_paths=num_meta_paths, in_size=in_size, hid_size=hid_size,
        num_heads=num_heads, sem_hidden=sem_hidden,
        relation_dim=relation_dim, num_relations=num_relations)

    h = jax.random.normal(kh, (num_nodes, in_size), jnp.float32)
    # random binary adjacency per metapath (int8 mask), with self-loops
    rand_edges = jax.random.uniform(
        ka, (num_meta_paths, num_nodes, num_nodes)) < 0.3
    adj = (rand_edges | jnp.eye(num_nodes, dtype=bool)[None]).astype(jnp.int8)

    out = han_forward(h, adj, params, alpha=alpha)
    out = jax.block_until_ready(out)
    assert out.shape == (num_nodes, num_heads * hid_size)
    assert bool(jnp.all(jnp.isfinite(out)))
    print("KERNEL_OK")
</pallas_src>

<mosaic_0001>
module attributes {stable_mosaic.version = 11 : i64} {
  func.func @_gat_project_kernel(%arg0: i32, %arg1: memref<16x16xf32, #tpu.memory_space<vmem>>, %arg2: memref<2x16x32xbf16, #tpu.memory_space<vmem>>, %arg3: memref<2x16x32xbf16, #tpu.memory_space<vmem>>) attributes {dimension_semantics = [#tpu.dimension_semantics<parallel>], iteration_bounds = array<i64: 1>, scalar_prefetch = 0 : i64, scratch_operands = 0 : i64, tpu.core_type = #tpu.core_type<tc>, window_params = [{transform_indices = @transform_0, window_bounds = array<i64: 16, 16>}, {pipeline_mode = #tpu.pipeline_mode<synchronous>, transform_indices = @transform_1, window_bounds = array<i64: 2, 16, 32>}, {transform_indices = @transform_2, window_bounds = array<i64: 2, 16, 32>}]} {
    %c0 = arith.constant 0 : index
    %c0_0 = arith.constant 0 : index
    %0 = vector.load %arg1[%c0, %c0_0] : memref<16x16xf32, #tpu.memory_space<vmem>>, vector<16x16xf32>
    %1 = arith.truncf %0 : vector<16x16xf32> to vector<16x16xbf16>
    %c0_1 = arith.constant 0 : index
    %c0_2 = arith.constant 0 : index
    %c0_3 = arith.constant 0 : index
    %2 = vector.load %arg2[%c0_1, %c0_2, %c0_3] : memref<2x16x32xbf16, #tpu.memory_space<vmem>>, vector<1x16x32xbf16>
    %3 = vector.shape_cast %2 : vector<1x16x32xbf16> to vector<16x32xbf16>
    %cst = arith.constant dense<0.000000e+00> : vector<16x32xf32>
    %4 = tpu.matmul %1, %3, %cst {dimension_numbers = #tpu.dot_dimension_numbers<[1], [0], [0], [1], [0, 0, 1, 1], [], []>} : vector<16x16xbf16>, vector<16x32xbf16>, vector<16x32xf32> -> vector<16x32xf32>
    %5 = arith.truncf %4 : vector<16x32xf32> to vector<16x32xbf16>
    %c0_4 = arith.constant 0 : index
    %c0_5 = arith.constant 0 : index
    %c0_6 = arith.constant 0 : index
    %6 = vector.load %arg3[%c0_4, %c0_5, %c0_6] : memref<2x16x32xbf16, #tpu.memory_space<vmem>>, vector<1x16x32xbf16>
    %7 = vector.shape_cast %6 : vector<1x16x32xbf16> to vector<16x32xbf16>
    %8 = vector.shape_cast %5 : vector<16x32xbf16> to vector<1x16x32xbf16>
    tpu.vector_store %arg3[%c0_4, %c0_5, %c0_6], %8 {strides = array<i32>} : memref<2x16x32xbf16, #tpu.memory_space<vmem>>, vector<1x16x32xbf16>,
    %c1 = arith.constant 1 : index
    %c0_7 = arith.constant 0 : index
    %c0_8 = arith.constant 0 : index
    %9 = vector.load %arg2[%c1, %c0_7, %c0_8] : memref<2x16x32xbf16, #tpu.memory_space<vmem>>, vector<1x16x32xbf16>
    %10 = vector.shape_cast %9 : vector<1x16x32xbf16> to vector<16x32xbf16>
    %cst_9 = arith.constant dense<0.000000e+00> : vector<16x32xf32>
    %11 = tpu.matmul %1, %10, %cst_9 {dimension_numbers = #tpu.dot_dimension_numbers<[1], [0], [0], [1], [0, 0, 1, 1], [], []>} : vector<16x16xbf16>, vector<16x32xbf16>, vector<16x32xf32> -> vector<16x32xf32>
    %12 = arith.truncf %11 : vector<16x32xf32> to vector<16x32xbf16>
    %c1_10 = arith.constant 1 : index
    %c0_11 = arith.constant 0 : index
    %c0_12 = arith.constant 0 : index
    %13 = vector.load %arg3[%c1_10, %c0_11, %c0_12] : memref<2x16x32xbf16, #tpu.memory_space<vmem>>, vector<1x16x32xbf16>
    %14 = vector.shape_cast %13 : vector<1x16x32xbf16> to vector<16x32xbf16>
    %15 = vector.shape_cast %12 : vector<16x32xbf16> to vector<1x16x32xbf16>
    tpu.vector_store %arg3[%c1_10, %c0_11, %c0_12], %15 {strides = array<i32>} : memref<2x16x32xbf16, #tpu.memory_space<vmem>>, vector<1x16x32xbf16>,
    return
  }
  func.func @transform_0(%arg0: i32) -> (i32, i32) {
    %c0_i32 = arith.constant 0 : i32
    %c0_i32_0 = arith.constant 0 : i32
    return %arg0, %c0_i32 : i32, i32
  }
  func.func @transform_1(%arg0: i32) -> (i32, i32, i32) {
    %c0_i32 = arith.constant 0 : i32
    %c0_i32_0 = arith.constant 0 : i32
    %c0_i32_1 = arith.constant 0 : i32
    %c0_i32_2 = arith.constant 0 : i32
    return %c0_i32, %c0_i32_0, %c0_i32_1 : i32, i32, i32
  }
  func.func @transform_2(%arg0: i32) -> (i32, i32, i32) {
    %c0_i32 = arith.constant 0 : i32
    %c0_i32_0 = arith.constant 0 : i32
    %c0_i32_1 = arith.constant 0 : i32
    return %c0_i32, %arg0, %c0_i32_0 : i32, i32, i32
  }
}

module attributes {stable_mosaic.version = 11 : i64} {
  func.func @_sem_scores_kernel(%arg0: i32, %arg1: memref<2x16x32xbf16, #tpu.memory_space<vmem>>, %arg2: memref<32x128xbf16, #tpu.memory_space<vmem>>, %arg3: memref<1x128xf32, #tpu.memory_space<vmem>>, %arg4: memref<1x128xf32, #tpu.memory_space<vmem>>, %arg5: memref<1x2xf32, #tpu.memory_space<vmem>>) attributes {dimension_semantics = [#tpu.dimension_semantics<arbitrary>], iteration_bounds = array<i64: 1>, scalar_prefetch = 0 : i64, scratch_operands = 0 : i64, tpu.core_type = #tpu.core_type<tc>, window_params = [{transform_indices = @transform_0, window_bounds = array<i64: 2, 16, 32>}, {pipeline_mode = #tpu.pipeline_mode<synchronous>, transform_indices = @transform_1, window_bounds = array<i64: 32, 128>}, {pipeline_mode = #tpu.pipeline_mode<synchronous>, transform_indices = @transform_2, window_bounds = array<i64: 1, 128>}, {pipeline_mode = #tpu.pipeline_mode<synchronous>, transform_indices = @transform_3, window_bounds = array<i64: 1, 128>}, {pipeline_mode = #tpu.pipeline_mode<synchronous>, transform_indices = @transform_4, window_bounds = array<i64: 1, 2>}]} {
    %c0_i32 = arith.constant 0 : i32
    %0 = arith.cmpi eq, %arg0, %c0_i32 : i32
    %1 = arith.extui %0 : i1 to i32
    %c0_i32_0 = arith.constant 0 : i32
    %2 = arith.cmpi ne, %1, %c0_i32_0 : i32
    scf.if %2 {
      %cst_26 = arith.constant 0.000000e+00 : f32
      %39 = vector.broadcast %cst_26 : f32 to vector<1x2xf32>
      %c0_27 = arith.constant 0 : index
      %c0_28 = arith.constant 0 : index
      %40 = vector.load %arg5[%c0_27, %c0_28] : memref<1x2xf32, #tpu.memory_space<vmem>>, vector<1x2xf32>
      tpu.vector_store %arg5[%c0_27, %c0_28], %39 {strides = array<i32>} : memref<1x2xf32, #tpu.memory_space<vmem>>, vector<1x2xf32>,
    } else {
    }
    %c0 = arith.constant 0 : index
    %c0_1 = arith.constant 0 : index
    %3 = vector.load %arg2[%c0, %c0_1] : memref<32x128xbf16, #tpu.memory_space<vmem>>, vector<32x128xbf16>
    %c0_2 = arith.constant 0 : index
    %c0_3 = arith.constant 0 : index
    %4 = vector.load %arg3[%c0_2, %c0_3] : memref<1x128xf32, #tpu.memory_space<vmem>>, vector<1x128xf32>
    %c0_4 = arith.constant 0 : index
    %c0_5 = arith.constant 0 : index
    %5 = vector.load %arg4[%c0_4, %c0_5] : memref<1x128xf32, #tpu.memory_space<vmem>>, vector<1x128xf32>
    %c0_6 = arith.constant 0 : index
    %c0_7 = arith.constant 0 : index
    %c0_8 = arith.constant 0 : index
    %6 = vector.load %arg1[%c0_6, %c0_7, %c0_8] : memref<2x16x32xbf16, #tpu.memory_space<vmem>>, vector<1x16x32xbf16>
    %7 = vector.shape_cast %6 : vector<1x16x32xbf16> to vector<16x32xbf16>
    %cst = arith.constant dense<0.000000e+00> : vector<16x128xf32>
    %8 = tpu.matmul %7, %3, %cst {dimension_numbers = #tpu.dot_dimension_numbers<[1], [0], [0], [1], [0, 0, 1, 1], [], []>} : vector<16x32xbf16>, vector<32x128xbf16>, vector<16x128xf32> -> vector<16x128xf32>
    %9 = vector.broadcast %4 : vector<1x128xf32> to vector<16x128xf32>
    %10 = arith.addf %8, %9 : vector<16x128xf32>
    %11 = math.tanh %10 : vector<16x128xf32>
    %12 = vector.broadcast %5 : vector<1x128xf32> to vector<16x128xf32>
    %13 = arith.mulf %11, %12 : vector<16x128xf32>
    %cst_9 = arith.constant dense<0.000000e+00> : vector<16xf32>
    %14 = vector.multi_reduction <add>, %13, %cst_9 [1] : vector<16x128xf32> to vector<16xf32>
    %15 = vector.shape_cast %14 : vector<16xf32> to vector<16x1xf32>
    %cst_10 = arith.constant dense<0.000000e+00> : vector<1xf32>
    %16 = vector.multi_reduction <add>, %15, %cst_10 [0] : vector<16x1xf32> to vector<1xf32>
    %17 = vector.shape_cast %16 : vector<1xf32> to vector<1x1xf32>
    %c0_11 = arith.constant 0 : index
    %c0_12 = arith.constant 0 : index
    %18 = vector.load %arg5[%c0_11, %c0_12] : memref<1x2xf32, #tpu.memory_space<vmem>>, vector<1x1xf32>
    %19 = arith.addf %18, %17 : vector<1x1xf32>
    %c0_13 = arith.constant 0 : index
    %c0_14 = arith.constant 0 : index
    %20 = vector.load %arg5[%c0_13, %c0_14] : memref<1x2xf32, #tpu.memory_space<vmem>>, vector<1x1xf32>
    tpu.vector_store %arg5[%c0_13, %c0_14], %19 {strides = array<i32>} : memref<1x2xf32, #tpu.memory_space<vmem>>, vector<1x1xf32>,
    %c1 = arith.constant 1 : index
    %c0_15 = arith.constant 0 : index
    %c0_16 = arith.constant 0 : index
    %21 = vector.load %arg1[%c1, %c0_15, %c0_16] : memref<2x16x32xbf16, #tpu.memory_space<vmem>>, vector<1x16x32xbf16>
    %22 = vector.shape_cast %21 : vector<1x16x32xbf16> to vector<16x32xbf16>
    %cst_17 = arith.constant dense<0.000000e+00> : vector<16x128xf32>
    %23 = tpu.matmul %22, %3, %cst_17 {dimension_numbers = #tpu.dot_dimension_numbers<[1], [0], [0], [1], [0, 0, 1, 1], [], []>} : vector<16x32xbf16>, vector<32x128xbf16>, vector<16x128xf32> -> vector<16x128xf32>
    %24 = vector.broadcast %4 : vector<1x128xf32> to vector<16x128xf32>
    %25 = arith.addf %23, %24 : vector<16x128xf32>
    %26 = math.tanh %25 : vector<16x128xf32>
    %27 = vector.broadcast %5 : vector<1x128xf32> to vector<16x128xf32>
    %28 = arith.mulf %26, %27 : vector<16x128xf32>
    %cst_18 = arith.constant dense<0.000000e+00> : vector<16xf32>
    %29 = vector.multi_reduction <add>, %28, %cst_18 [1] : vector<16x128xf32> to vector<16xf32>
    %30 = vector.shape_cast %29 : vector<16xf32> to vector<16x1xf32>
    %cst_19 = arith.constant dense<0.000000e+00> : vector<1xf32>
    %31 = vector.multi_reduction <add>, %30, %cst_19 [0] : vector<16x1xf32> to vector<1xf32>
    %32 = vector.shape_cast %31 : vector<1xf32> to vector<1x1xf32>
    %c0_20 = arith.constant 0 : index
    %c1_21 = arith.constant 1 : index
    %33 = vector.load %arg5[%c0_20, %c1_21] : memref<1x2xf32, #tpu.memory_space<vmem>>, vector<1x1xf32>
    %34 = arith.addf %33, %32 : vector<1x1xf32>
    %c0_22 = arith.constant 0 : index
    %c1_23 = arith.constant 1 : index
    %35 = vector.load %arg5[%c0_22, %c1_23] : memref<1x2xf32, #tpu.memory_space<vmem>>, vector<1x1xf32>
    tpu.vector_store %arg5[%c0_22, %c1_23], %34 {strides = array<i32>} : memref<1x2xf32, #tpu.memory_space<vmem>>, vector<1x1xf32>,
    %c0_i32_24 = arith.constant 0 : i32
    %36 = arith.cmpi eq, %arg0, %c0_i32_24 : i32
    %37 = arith.extui %36 : i1 to i32
    %c0_i32_25 = arith.constant 0 : i32
    %38 = arith.cmpi ne, %37, %c0_i32_25 : i32
    scf.if %38 {
      %c0_26 = arith.constant 0 : index
      %c0_27 = arith.constant 0 : index
      %39 = vector.load %arg5[%c0_26, %c0_27] : memref<1x2xf32, #tpu.memory_space<vmem>>, vector<1x2xf32>
      %cst_28 = arith.constant 6.250000e-02 : f32
      %40 = vector.broadcast %cst_28 : f32 to vector<1x2xf32>
      %41 = arith.mulf %39, %40 : vector<1x2xf32>
      %cst_29 = arith.constant dense<0xFF800000> : vector<1xf32>
      %42 = vector.multi_reduction <maximumf>, %41, %cst_29 [1] : vector<1x2xf32> to vector<1xf32>
      %43 = vector.shape_cast %42 : vector<1xf32> to vector<1x1xf32>
      %44 = vector.broadcast %43 : vector<1x1xf32> to vector<1x2xf32>
      %45 = arith.subf %41, %44 : vector<1x2xf32>
      %46 = math.exp %45 : vector<1x2xf32>
      %cst_30 = arith.constant dense<0.000000e+00> : vector<1xf32>
      %47 = vector.multi_reduction <add>, %46, %cst_30 [1] : vector<1x2xf32> to vector<1xf32>
      %48 = vector.shape_cast %47 : vector<1xf32> to vector<1x1xf32>
      %49 = tpu.reciprocal %48 {approx = true} : vector<1x1xf32> -> vector<1x1xf32>
      %50 = vector.broadcast %49 : vector<1x1xf32> to vector<1x2xf32>
      %51 = arith.mulf %46, %50 : vector<1x2xf32>
      %c0_31 = arith.constant 0 : index
      %c0_32 = arith.constant 0 : index
      %52 = vector.load %arg5[%c0_31, %c0_32] : memref<1x2xf32, #tpu.memory_space<vmem>>, vector<1x2xf32>
      tpu.vector_store %arg5[%c0_31, %c0_32], %51 {strides = array<i32>} : memref<1x2xf32, #tpu.memory_space<vmem>>, vector<1x2xf32>,
    } else {
    }
    return
  }
  func.func @transform_0(%arg0: i32) -> (i32, i32, i32) {
    %c0_i32 = arith.constant 0 : i32
    %c0_i32_0 = arith.constant 0 : i32
    %c0_i32_1 = arith.constant 0 : i32
    return %c0_i32, %arg0, %c0_i32_0 : i32, i32, i32
  }
  func.func @transform_1(%arg0: i32) -> (i32, i32) {
    %c0_i32 = arith.constant 0 : i32
    %c0_i32_0 = arith.constant 0 : i32
    %c0_i32_1 = arith.constant 0 : i32
    return %c0_i32, %c0_i32_0 : i32, i32
  }
  func.func @transform_2(%arg0: i32) -> (i32, i32) {
    %c0_i32 = arith.constant 0 : i32
    %c0_i32_0 = arith.constant 0 : i32
    %c0_i32_1 = arith.constant 0 : i32
    return %c0_i32, %c0_i32_0 : i32, i32
  }
  func.func @transform_3(%arg0: i32) -> (i32, i32) {
    %c0_i32 = arith.constant 0 : i32
    %c0_i32_0 = arith.constant 0 : i32
    %c0_i32_1 = arith.constant 0 : i32
    return %c0_i32, %c0_i32_0 : i32, i32
  }
  func.func @transform_4(%arg0: i32) -> (i32, i32) {
    %c0_i32 = arith.constant 0 : i32
    %c0_i32_0 = arith.constant 0 : i32
    %c0_i32_1 = arith.constant 0 : i32
    return %c0_i32, %c0_i32_0 : i32, i32
  }
}

module attributes {stable_mosaic.version = 11 : i64} {
  func.func @_gat_attention_kernel(%arg0: i32, %arg1: i32, %arg2: i32, %arg3: memref<1x16x32xbf16, #tpu.memory_space<vmem>>, %arg4: memref<1x16x32xbf16, #tpu.memory_space<vmem>>, %arg5: memref<1x32x1xbf16, #tpu.memory_space<vmem>>, %arg6: memref<1x32x1xbf16, #tpu.memory_space<vmem>>, %arg7: memref<1x16x16xi8, #tpu.memory_space<vmem>>, %arg8: memref<1x16x32xbf16, #tpu.memory_space<vmem>>, %arg9: memref<16x1xf32, #tpu.memory_space<vmem>>, %arg10: memref<16x1xf32, #tpu.memory_space<vmem>>, %arg11: memref<16x32xf32, #tpu.memory_space<vmem>>) attributes {dimension_semantics = [#tpu.dimension_semantics<parallel>, #tpu.dimension_semantics<parallel>, #tpu.dimension_semantics<arbitrary>], iteration_bounds = array<i64: 2, 1, 1>, scalar_prefetch = 0 : i64, scratch_operands = 3 : i64, tpu.core_type = #tpu.core_type<tc>, window_params = [{transform_indices = @transform_0, window_bounds = array<i64: 1, 16, 32>}, {transform_indices = @transform_1, window_bounds = array<i64: 1, 16, 32>}, {transform_indices = @transform_2, window_bounds = array<i64: 1, 32, 1>}, {transform_indices = @transform_3, window_bounds = array<i64: 1, 32, 1>}, {transform_indices = @transform_4, window_bounds = array<i64: 1, 16, 16>}, {transform_indices = @transform_5, window_bounds = array<i64: 1, 16, 32>}]} {
    %c0_i32 = arith.constant 0 : i32
    %0 = arith.cmpi eq, %arg2, %c0_i32 : i32
    %1 = arith.extui %0 : i1 to i32
    %c0_i32_0 = arith.constant 0 : i32
    %2 = arith.cmpi ne, %1, %c0_i32_0 : i32
    scf.if %2 {
      %cst_36 = arith.constant -1.000000e+09 : f32
      %53 = vector.broadcast %cst_36 : f32 to vector<16x1xf32>
      %c0_37 = arith.constant 0 : index
      %c0_38 = arith.constant 0 : index
      %54 = vector.load %arg9[%c0_37, %c0_38] : memref<16x1xf32, #tpu.memory_space<vmem>>, vector<16x1xf32>
      tpu.vector_store %arg9[%c0_37, %c0_38], %53 {strides = array<i32>} : memref<16x1xf32, #tpu.memory_space<vmem>>, vector<16x1xf32>,
      %cst_39 = arith.constant 0.000000e+00 : f32
      %55 = vector.broadcast %cst_39 : f32 to vector<16x1xf32>
      %c0_40 = arith.constant 0 : index
      %c0_41 = arith.constant 0 : index
      %56 = vector.load %arg10[%c0_40, %c0_41] : memref<16x1xf32, #tpu.memory_space<vmem>>, vector<16x1xf32>
      tpu.vector_store %arg10[%c0_40, %c0_41], %55 {strides = array<i32>} : memref<16x1xf32, #tpu.memory_space<vmem>>, vector<16x1xf32>,
      %cst_42 = arith.constant 0.000000e+00 : f32
      %57 = vector.broadcast %cst_42 : f32 to vector<16x32xf32>
      %c0_43 = arith.constant 0 : index
      %c0_44 = arith.constant 0 : index
      %58 = vector.load %arg11[%c0_43, %c0_44] : memref<16x32xf32, #tpu.memory_space<vmem>>, vector<16x32xf32>
      tpu.vector_store %arg11[%c0_43, %c0_44], %57 {strides = array<i32>} : memref<16x32xf32, #tpu.memory_space<vmem>>, vector<16x32xf32>,
    } else {
    }
    %c0 = arith.constant 0 : index
    %c0_1 = arith.constant 0 : index
    %c0_2 = arith.constant 0 : index
    %3 = vector.load %arg3[%c0, %c0_1, %c0_2] : memref<1x16x32xbf16, #tpu.memory_space<vmem>>, vector<1x16x32xbf16>
    %4 = vector.shape_cast %3 : vector<1x16x32xbf16> to vector<16x32xbf16>
    %c0_3 = arith.constant 0 : index
    %c0_4 = arith.constant 0 : index
    %c0_5 = arith.constant 0 : index
    %5 = vector.load %arg4[%c0_3, %c0_4, %c0_5] : memref<1x16x32xbf16, #tpu.memory_space<vmem>>, vector<1x16x32xbf16>
    %6 = vector.shape_cast %5 : vector<1x16x32xbf16> to vector<16x32xbf16>
    %c0_6 = arith.constant 0 : index
    %c0_7 = arith.constant 0 : index
    %c0_8 = arith.constant 0 : index
    %7 = vector.load %arg5[%c0_6, %c0_7, %c0_8] : memref<1x32x1xbf16, #tpu.memory_space<vmem>>, vector<1x32x1xbf16>
    %8 = vector.shape_cast %7 : vector<1x32x1xbf16> to vector<32x1xbf16>
    %c0_9 = arith.constant 0 : index
    %c0_10 = arith.constant 0 : index
    %c0_11 = arith.constant 0 : index
    %9 = vector.load %arg6[%c0_9, %c0_10, %c0_11] : memref<1x32x1xbf16, #tpu.memory_space<vmem>>, vector<1x32x1xbf16>
    %10 = vector.shape_cast %9 : vector<1x32x1xbf16> to vector<32x1xbf16>
    %c0_12 = arith.constant 0 : index
    %c0_13 = arith.constant 0 : index
    %c0_14 = arith.constant 0 : index
    %11 = vector.load %arg7[%c0_12, %c0_13, %c0_14] : memref<1x16x16xi8, #tpu.memory_space<vmem>>, vector<1x16x16xi8>
    %12 = vector.shape_cast %11 : vector<1x16x16xi8> to vector<16x16xi8>
    %c0_i8 = arith.constant 0 : i8
    %13 = vector.broadcast %c0_i8 : i8 to vector<16x16xi8>
    %14 = arith.cmpi ne, %12, %13 : vector<16x16xi8>
    %cst = arith.constant dense<0.000000e+00> : vector<16x1xf32>
    %15 = tpu.matmul %4, %8, %cst {dimension_numbers = #tpu.dot_dimension_numbers<[1], [0], [0], [1], [0, 0, 1, 1], [], []>} : vector<16x32xbf16>, vector<32x1xbf16>, vector<16x1xf32> -> vector<16x1xf32>
    %cst_15 = arith.constant dense<0.000000e+00> : vector<1x16xf32>
    %16 = tpu.matmul %10, %6, %cst_15 {dimension_numbers = #tpu.dot_dimension_numbers<[0], [1], [1], [0], [0, 1, 1, 0], [], []>} : vector<32x1xbf16>, vector<16x32xbf16>, vector<1x16xf32> -> vector<1x16xf32>
    %17 = vector.broadcast %15 : vector<16x1xf32> to vector<16x16xf32>
    %18 = vector.broadcast %16 : vector<1x16xf32> to vector<16x16xf32>
    %19 = arith.addf %17, %18 : vector<16x16xf32>
    %cst_16 = arith.constant 0.000000e+00 : f32
    %20 = vector.broadcast %cst_16 : f32 to vector<16x16xf32>
    %21 = arith.cmpf ogt, %19, %20 : vector<16x16xf32>
    %cst_17 = arith.constant 2.000000e-01 : f32
    %22 = vector.broadcast %cst_17 : f32 to vector<16x16xf32>
    %23 = arith.mulf %19, %22 : vector<16x16xf32>
    %24 = arith.select %21, %19, %23 : vector<16x16xi1>, vector<16x16xf32>
    %cst_18 = arith.constant -1.000000e+09 : f32
    %25 = vector.broadcast %cst_18 : f32 to vector<16x16xf32>
    %26 = arith.select %14, %24, %25 : vector<16x16xi1>, vector<16x16xf32>
    %c0_19 = arith.constant 0 : index
    %c0_20 = arith.constant 0 : index
    %27 = vector.load %arg9[%c0_19, %c0_20] : memref<16x1xf32, #tpu.memory_space<vmem>>, vector<16x1xf32>
    %cst_21 = arith.constant dense<0xFF800000> : vector<16xf32>
    %28 = vector.multi_reduction <maximumf>, %26, %cst_21 [1] : vector<16x16xf32> to vector<16xf32>
    %29 = vector.shape_cast %28 : vector<16xf32> to vector<16x1xf32>
    %30 = arith.maximumf %27, %29 : vector<16x1xf32>
    %31 = arith.subf %27, %30 : vector<16x1xf32>
    %32 = math.exp %31 : vector<16x1xf32>
    %33 = vector.broadcast %30 : vector<16x1xf32> to vector<16x16xf32>
    %34 = arith.subf %26, %33 : vector<16x16xf32>
    %35 = math.exp %34 : vector<16x16xf32>
    %c0_22 = arith.constant 0 : index
    %c0_23 = arith.constant 0 : index
    %36 = vector.load %arg10[%c0_22, %c0_23] : memref<16x1xf32, #tpu.memory_space<vmem>>, vector<16x1xf32>
    %37 = arith.mulf %32, %36 : vector<16x1xf32>
    %cst_24 = arith.constant dense<0.000000e+00> : vector<16xf32>
    %38 = vector.multi_reduction <add>, %35, %cst_24 [1] : vector<16x16xf32> to vector<16xf32>
    %39 = vector.shape_cast %38 : vector<16xf32> to vector<16x1xf32>
    %40 = arith.addf %37, %39 : vector<16x1xf32>
    %c0_25 = arith.constant 0 : index
    %c0_26 = arith.constant 0 : index
    %41 = vector.load %arg10[%c0_25, %c0_26] : memref<16x1xf32, #tpu.memory_space<vmem>>, vector<16x1xf32>
    tpu.vector_store %arg10[%c0_25, %c0_26], %40 {strides = array<i32>} : memref<16x1xf32, #tpu.memory_space<vmem>>, vector<16x1xf32>,
    %c0_27 = arith.constant 0 : index
    %c0_28 = arith.constant 0 : index
    %42 = vector.load %arg11[%c0_27, %c0_28] : memref<16x32xf32, #tpu.memory_space<vmem>>, vector<16x32xf32>
    %43 = vector.broadcast %32 : vector<16x1xf32> to vector<16x32xf32>
    %44 = arith.mulf %43, %42 : vector<16x32xf32>
    %45 = arith.truncf %35 : vector<16x16xf32> to vector<16x16xbf16>
    %cst_29 = arith.constant dense<0.000000e+00> : vector<16x32xf32>
    %46 = tpu.matmul %45, %6, %cst_29 {dimension_numbers = #tpu.dot_dimension_numbers<[1], [0], [0], [1], [0, 0, 1, 1], [], []>} : vector<16x16xbf16>, vector<16x32xbf16>, vector<16x32xf32> -> vector<16x32xf32>
    %47 = arith.addf %44, %46 : vector<16x32xf32>
    %c0_30 = arith.constant 0 : index
    %c0_31 = arith.constant 0 : index
    %48 = vector.load %arg11[%c0_30, %c0_31] : memref<16x32xf32, #tpu.memory_space<vmem>>, vector<16x32xf32>
    tpu.vector_store %arg11[%c0_30, %c0_31], %47 {strides = array<i32>} : memref<16x32xf32, #tpu.memory_space<vmem>>, vector<16x32xf32>,
    %c0_32 = arith.constant 0 : index
    %c0_33 = arith.constant 0 : index
    %49 = vector.load %arg9[%c0_32, %c0_33] : memref<16x1xf32, #tpu.memory_space<vmem>>, vector<16x1xf32>
    tpu.vector_store %arg9[%c0_32, %c0_33], %30 {strides = array<i32>} : memref<16x1xf32, #tpu.memory_space<vmem>>, vector<16x1xf32>,
    %c0_i32_34 = arith.constant 0 : i32
    %50 = arith.cmpi eq, %arg2, %c0_i32_34 : i32
    %51 = arith.extui %50 : i1 to i32
    %c0_i32_35 = arith.constant 0 : i32
    %52 = arith.cmpi ne, %51, %c0_i32_35 : i32
    scf.if %52 {
      %c0_36 = arith.constant 0 : index
      %c0_37 = arith.constant 0 : index
      %53 = vector.load %arg10[%c0_36, %c0_37] : memref<16x1xf32, #tpu.memory_space<vmem>>, vector<16x1xf32>
      %cst_38 = arith.constant 1.000000e-30 : f32
      %54 = vector.broadcast %cst_38 : f32 to vector<16x1xf32>
      %55 = arith.maximumf %53, %54 : vector<16x1xf32>
      %56 = tpu.reciprocal %55 {approx = true} : vector<16x1xf32> -> vector<16x1xf32>
      %c0_39 = arith.constant 0 : index
      %c0_40 = arith.constant 0 : index
      %57 = vector.load %arg11[%c0_39, %c0_40] : memref<16x32xf32, #tpu.memory_space<vmem>>, vector<16x32xf32>
      %58 = vector.broadcast %56 : vector<16x1xf32> to vector<16x32xf32>
      %59 = arith.mulf %57, %58 : vector<16x32xf32>
      %cst_41 = arith.constant 0.000000e+00 : f32
      %60 = vector.broadcast %cst_41 : f32 to vector<16x32xf32>
      %61 = arith.cmpf ogt, %59, %60 : vector<16x32xf32>
      %cst_42 = arith.constant 0.000000e+00 : f32
      %62 = vector.broadcast %cst_42 : f32 to vector<16x32xf32>
      %63 = arith.minimumf %59, %62 : vector<16x32xf32>
      %64 = math.exp %63 : vector<16x32xf32>
      %cst_43 = arith.constant 1.000000e+00 : f32
      %65 = vector.broadcast %cst_43 : f32 to vector<16x32xf32>
      %66 = arith.subf %64, %65 : vector<16x32xf32>
      %67 = arith.select %61, %59, %66 : vector<16x32xi1>, vector<16x32xf32>
      %68 = arith.truncf %67 : vector<16x32xf32> to vector<16x32xbf16>
      %c0_44 = arith.constant 0 : index
      %c0_45 = arith.constant 0 : index
      %c0_46 = arith.constant 0 : index
      %69 = vector.load %arg8[%c0_44, %c0_45, %c0_46] : memref<1x16x32xbf16, #tpu.memory_space<vmem>>, vector<1x16x32xbf16>
      %70 = vector.shape_cast %69 : vector<1x16x32xbf16> to vector<16x32xbf16>
      %71 = vector.shape_cast %68 : vector<16x32xbf16> to vector<1x16x32xbf16>
      tpu.vector_store %arg8[%c0_44, %c0_45, %c0_46], %71 {strides = array<i32>} : memref<1x16x32xbf16, #tpu.memory_space<vmem>>, vector<1x16x32xbf16>,
    } else {
    }
    return
  }
  func.func @transform_0(%arg0: i32, %arg1: i32, %arg2: i32) -> (i32, i32, i32) {
    %c0_i32 = arith.constant 0 : i32
    %c0_i32_0 = arith.constant 0 : i32
    return %arg0, %arg1, %c0_i32 : i32, i32, i32
  }
  func.func @transform_1(%arg0: i32, %arg1: i32, %arg2: i32) -> (i32, i32, i32) {
    %c0_i32 = arith.constant 0 : i32
    %c0_i32_0 = arith.constant 0 : i32
    return %arg0, %arg2, %c0_i32 : i32, i32, i32
  }
  func.func @transform_2(%arg0: i32, %arg1: i32, %arg2: i32) -> (i32, i32, i32) {
    %c0_i32 = arith.constant 0 : i32
    %c0_i32_0 = arith.constant 0 : i32
    %c0_i32_1 = arith.constant 0 : i32
    return %arg0, %c0_i32, %c0_i32_0 : i32, i32, i32
  }
  func.func @transform_3(%arg0: i32, %arg1: i32, %arg2: i32) -> (i32, i32, i32) {
    %c0_i32 = arith.constant 0 : i32
    %c0_i32_0 = arith.constant 0 : i32
    %c0_i32_1 = arith.constant 0 : i32
    return %arg0, %c0_i32, %c0_i32_0 : i32, i32, i32
  }
  func.func @transform_4(%arg0: i32, %arg1: i32, %arg2: i32) -> (i32, i32, i32) {
    %c0_i32 = arith.constant 0 : i32
    return %arg0, %arg1, %arg2 : i32, i32, i32
  }
  func.func @transform_5(%arg0: i32, %arg1: i32, %arg2: i32) -> (i32, i32, i32) {
    %c0_i32 = arith.constant 0 : i32
    %c0_i32_0 = arith.constant 0 : i32
    return %arg0, %arg1, %c0_i32 : i32, i32, i32
  }
}

module attributes {stable_mosaic.version = 11 : i64} {
  func.func @_sem_combine_kernel(%arg0: i32, %arg1: memref<1x2xf32, #tpu.memory_space<vmem>>, %arg2: memref<2x16x32xbf16, #tpu.memory_space<vmem>>, %arg3: memref<16x32xf32, #tpu.memory_space<vmem>>) attributes {dimension_semantics = [#tpu.dimension_semantics<parallel>], iteration_bounds = array<i64: 1>, scalar_prefetch = 0 : i64, scratch_operands = 0 : i64, tpu.core_type = #tpu.core_type<tc>, window_params = [{pipeline_mode = #tpu.pipeline_mode<synchronous>, transform_indices = @transform_0, window_bounds = array<i64: 1, 2>}, {transform_indices = @transform_1, window_bounds = array<i64: 2, 16, 32>}, {transform_indices = @transform_2, window_bounds = array<i64: 16, 32>}]} {
    %c0 = arith.constant 0 : index
    %c0_0 = arith.constant 0 : index
    %0 = vector.load %arg1[%c0, %c0_0] : memref<1x2xf32, #tpu.memory_space<vmem>>, vector<1x2xf32>
    %1 = vector.extract_strided_slice %0 {offsets = [0, 0], sizes = [1, 1], strides = [1, 1]} : vector<1x2xf32> to vector<1x1xf32>
    %c0_1 = arith.constant 0 : index
    %c0_2 = arith.constant 0 : index
    %c0_3 = arith.constant 0 : index
    %2 = vector.load %arg2[%c0_1, %c0_2, %c0_3] : memref<2x16x32xbf16, #tpu.memory_space<vmem>>, vector<1x16x32xbf16>
    %3 = vector.shape_cast %2 : vector<1x16x32xbf16> to vector<16x32xbf16>
    %4 = arith.extf %3 : vector<16x32xbf16> to vector<16x32xf32>
    %5 = vector.broadcast %1 : vector<1x1xf32> to vector<16x32xf32>
    %6 = arith.mulf %5, %4 : vector<16x32xf32>
    %7 = vector.extract_strided_slice %0 {offsets = [0, 1], sizes = [1, 1], strides = [1, 1]} : vector<1x2xf32> to vector<1x1xf32>
    %c1 = arith.constant 1 : index
    %c0_4 = arith.constant 0 : index
    %c0_5 = arith.constant 0 : index
    %8 = vector.load %arg2[%c1, %c0_4, %c0_5] : memref<2x16x32xbf16, #tpu.memory_space<vmem>>, vector<1x16x32xbf16>
    %9 = vector.shape_cast %8 : vector<1x16x32xbf16> to vector<16x32xbf16>
    %10 = arith.extf %9 : vector<16x32xbf16> to vector<16x32xf32>
    %11 = vector.broadcast %7 : vector<1x1xf32> to vector<16x32xf32>
    %12 = arith.mulf %11, %10 : vector<16x32xf32>
    %13 = arith.addf %6, %12 : vector<16x32xf32>
    %c0_6 = arith.constant 0 : index
    %c0_7 = arith.constant 0 : index
    %14 = vector.load %arg3[%c0_6, %c0_7] : memref<16x32xf32, #tpu.memory_space<vmem>>, vector<16x32xf32>
    tpu.vector_store %arg3[%c0_6, %c0_7], %13 {strides = array<i32>} : memref<16x32xf32, #tpu.memory_space<vmem>>, vector<16x32xf32>,
    return
  }
  func.func @transform_0(%arg0: i32) -> (i32, i32) {
    %c0_i32 = arith.constant 0 : i32
    %c0_i32_0 = arith.constant 0 : i32
    %c0_i32_1 = arith.constant 0 : i32
    return %c0_i32, %c0_i32_0 : i32, i32
  }
  func.func @transform_1(%arg0: i32) -> (i32, i32, i32) {
    %c0_i32 = arith.constant 0 : i32
    %c0_i32_0 = arith.constant 0 : i32
    %c0_i32_1 = arith.constant 0 : i32
    return %c0_i32, %arg0, %c0_i32_0 : i32, i32, i32
  }
  func.func @transform_2(%arg0: i32) -> (i32, i32) {
    %c0_i32 = arith.constant 0 : i32
    %c0_i32_0 = arith.constant 0 : i32
    return %arg0, %c0_i32 : i32, i32
  }
}

</mosaic_0001>

<bundles_post_ra>
// kernel: han_forward.4
= control target key start
LH: loop header
LB: loop body
LE: loop exit
PB: predicated region body
PF: predicated region fallthrough
CT: control target
= control target key end

     0   :  { %7 = vsyncpa [#allocation3], 0  ;;  %s223_s0 = inlined_call_operand.hbm [shape: f32[16,16], index: 0, kind: input, shape index: {}]   ;;  %s224_s1 = inlined_call_operand.hbm [shape: bf16[2,16,32], index: 1, kind: input, shape index: {}]   ;;  %s225_s2 = inlined_call_operand.vmem [shape: bf16[2,16,32], index: 2, kind: output, shape index: {}]  }
   0x1   :  { %s13_s11 = sshll.u32 %s223_s0, 4  ;;  %s14_s11 = int_to_ptr.hbm [resolvable:$true] %s13_s11 }
   0x2   :  { %8 = vsyncpa [#allocation5], 0  ;;  %s184_s12 = smov [#allocation2]   ;;  %s26_s16 = sshll.u32 %s224_s1, 4  ;;  %s27_s16 = int_to_ptr.hbm [resolvable:$true] %s26_s16 }
   0x3   :  { %s15_s13 = sshll.u32 %s184_s12, 4  ;;  %s185_s17 = smov 128   ;;  %s16_s13 = int_to_ptr.vmem [resolvable:$true] %s15_s13 }
   0x4   :  { %s186_s18 = smov 8   ;;  %s187_s19 = smov [#allocation4]  }
   0x5   :  { %21 = dma.hbm_to_vmem [thread:$0]  %s14_s11, 256, %s16_s13, [#allocation3], %s185_s17, %s185_s17, %s186_s18  }
   0x6   :  { %s28_s20 = sshll.u32 %s187_s19, 4  ;;  %s188_s21 = smov 64   ;;  %s29_s20 = int_to_ptr.vmem [resolvable:$true] %s28_s20 }
   0x7   :  { %s189_s22 = smov 4  }
   0x8   :  { %34 = dma.hbm_to_vmem [thread:$0]  %s27_s16, 256, %s29_s20, [#allocation5], %s188_s21, %s188_s21, %s189_s22  }
   0x9   :  { %180 = dma.done.wait [#allocation3], 256  }
   0xa   :  { %181 = vsyncadd [#allocation3], 4294967040 }
   0xb   :  { %182 = dma.done.wait [#allocation5], 256  }
   0xc   :  { %183 = vsyncadd [#allocation5], 4294967040  ;;  %v124_v0 = vld [vmem:[#allocation4] sm:$0xff]  ;;  %v125_v1 = vld [vmem:[#allocation4 + $0x8] sm:$0xff]  ;;  %vm55_vm0 = vcmask 130048   ;;  %vm75_vm1 = vcmask 257024  }
   0xd   :  { %v44_v2 = vld [vmem:[#allocation2] sm:$0xff]  ;;  %v45_v3 = vld [vmem:[#allocation2 + $0x8] sm:$0xff]  ;;  %66 = vmatpush.bf16.msra.mxu0 %v124_v0  ;;  %94 = vmatpush.bf16.msra.mxu1 %v125_v1 }
   0xe   :  { %v46_v4 = vpack.c.bf16 %v45_v3, %v44_v2 }
  0x10   :  { %116 = vmatmul.msk.bf16.vlgmr.msra.gmra.mxu0 %vm55_vm0, %v46_v4  ;;  %121 = vmatmul.msk.bf16.vlgmr.msra.gmra.mxu1 %vm55_vm0, %v46_v4 }
  0x8d   :  { %v68_v5 = vpop.f32.mrf.mxu0  ;;  %v96_v6 = vpop.f32.mrf.mxu1 }
  0x8e   :  { %v73_v7 = vpack.c.bf16 %v68_v5, %v68_v5  ;;  %v101_v8 = vpack.c.bf16 %v96_v6, %v96_v6 }
  0x90   :  { %76 = vst.msk [vmem:[%s225_s2] sm:$0xf] %vm75_vm1, %v73_v7 }
  0x91   :  { %122 = vst.msk [vmem:[%s225_s2 + $0x8] sm:$0xf] %vm75_vm1, %v101_v8 }
  0x95   :  { %v70_v9 = vpop.f32.mrf.mxu0  ;;  %v98_v10 = vpop.f32.mrf.mxu1 }
  0x96   :  { %v74_v11 = vpack.c.bf16 %v70_v9, %v70_v9  ;;  %v102_v12 = vpack.c.bf16 %v98_v10, %v98_v10 }
  0x98   :  { %77 = vst.msk [vmem:[%s225_s2 + $0x4] sm:$0xf] %vm75_vm1, %v74_v11 }
  0x99   :  { %123 = vst.msk [vmem:[%s225_s2 + $0xc] sm:$0xf] %vm75_vm1, %v102_v12 }
  0x9a   :  { %110 = vsyncpa [#allocation3], 1 }
  0x9b   :  { %111 = vsyncpa [#allocation5], 1 }

// kernel: han_forward.6
= control target key start
LH: loop header
LB: loop body
LE: loop exit
PB: predicated region body
PF: predicated region fallthrough
CT: control target
= control target key end

     0   :  { %vm52_vm0 = vcmask 261120   ;;  %vm22_vm1 = vcmask 8192   ;;  %v197_v22 = vmov 0.0   ;;  %vm90_vm2 = vcmask 0   ;;  %s266_s1 = inlined_call_operand.vmem [shape: bf16[32,128], index: 1, kind: input, shape index: {}]   ;;  %s267_s2 = inlined_call_operand.vmem [shape: f32[1,128], index: 2, kind: input, shape index: {}]   ;;  %s268_s0 = inlined_call_operand.vmem [shape: bf16[2,16,32], index: 0, kind: input, shape index: {}]   ;;  %s269_s3 = inlined_call_operand.vmem [shape: f32[1,128], index: 3, kind: input, shape index: {}]   ;;  %s270_s4 = inlined_call_operand.vmem [shape: f32[1,2], index: 4, kind: output, shape index: {}]  }
   0x1   :  { %v179_v0 = vld [vmem:[%s266_s1 + $0x8] sm:$0xff]  ;;  %v178_v1 = vld [vmem:[%s266_s1] sm:$0xff]  ;;  %23 = vst.msk [vmem:[%s270_s4] sm:$0x1] %vm22_vm1, %v197_v22  ;;  %vm134_vm3 = vcmask 8200  }
   0x2   :  { %62 = vmatpush.bf16.msra.mxu0 %v179_v0  ;;  %109 = vmatpush.bf16.msra.mxu1 %v179_v0  ;;  %v180_v2 = vld [vmem:[%s268_s0] sm:$0xff]  ;;  %v181_v3 = vld [vmem:[%s268_s0 + $0x8] sm:$0xff] }
   0x3   :  { %v183_v4 = vld [vmem:[%s267_s2] ss:$0 sm:$0xff] }
   0x4   :  { %v184_v9 = vld [vmem:[%s269_s3] ss:$0 sm:$0xff] }
   0x6   :  { %63 = vmatpush.bf16.msra.mxu0 %v178_v1  ;;  %110 = vmatpush.bf16.msra.mxu1 %v178_v1 }
   0x8   :  { %v88_v37 = vld [vmem:[%s270_s4] sm:$0x1] }
   0x9   :  { %170 = vmatmul.msk.bf16.vlgmr.msra.gmra.mxu0 %vm52_vm0, %v180_v2  ;;  %177 = vmatmul.msk.bf16.vlgmr.msra.gmra.mxu1 %vm52_vm0, %v181_v3 }
  0x86   :  { %v65_v5 = vpop.f32.mrf.mxu0  ;;  %v112_v6 = vpop.f32.mrf.mxu1 }
  0x87   :  { %v66_v7 = vadd.f32 %v183_v4, %v65_v5  ;;  %v113_v8 = vadd.f32 %v183_v4, %v112_v6 }
  0x89   :  { %185 = vtanh.f32 %v66_v7 }
  0x8a   :  { %187 = vtanh.f32 %v113_v8 }
  0x8e   :  { %v67_v10 = vpop.f32.mrf.mxu0  ;;  %v114_v11 = vpop.f32.mrf.mxu1 }
  0x8f   :  { %v186_v12 = vpop.eup %185  ;;  %v68_v13 = vadd.f32 %v183_v4, %v67_v10  ;;  %v115_v14 = vadd.f32 %v183_v4, %v114_v11 }
  0x90   :  { %v188_v15 = vpop.eup %187  ;;  %v75_v16 = vmul.f32 %v186_v12, %v184_v9 }
  0x91   :  { %189 = vtanh.f32 %v68_v13  ;;  %v119_v17 = vmul.f32 %v188_v15, %v184_v9 }
  0x92   :  { %191 = vtanh.f32 %v115_v14  ;;  %77 = vadd.xlane.f32.xlu0 %v75_v16 }
  0x93   :  { %121 = vadd.xlane.f32.xlu1 %v119_v17 }
  0x97   :  { %v190_v18 = vpop.eup %189 }
  0x98   :  { %v192_v19 = vpop.eup %191  ;;  %v76_v20 = vmul.f32 %v190_v18, %v184_v9 }
  0x99   :  { %v120_v21 = vmul.f32 %v192_v19, %v184_v9 }
  0x9a   :  { %79 = vadd.xlane.f32.xlu0 %v76_v20 }
  0x9b   :  { %123 = vadd.xlane.f32.xlu1 %v120_v21 }
 0x105   :  { %v78_v23 = vpop.xlane.xlu0 %77 }
 0x106   :  { %v122_v24 = vpop.xlane.xlu1 %121 }
 0x10d   :  { %v80_v25 = vpop.xlane.xlu0 %79 }
 0x10e   :  { %v124_v26 = vpop.xlane.xlu1 %123  ;;  %v81_v27 = vadd.f32 %v80_v25, %v78_v23 }
 0x10f   :  { %v125_v28 = vadd.f32 %v124_v26, %v122_v24 }
 0x110   :  { %v82_v29 = vrot.slane %v81_v27, 4 }
 0x111   :  { %v126_v30 = vrot.slane %v125_v28, 4 }
 0x112   :  { %v83_v31 = vadd.f32 %v82_v29, %v81_v27 }
 0x113   :  { %v127_v32 = vadd.f32 %v126_v30, %v125_v28 }
 0x114   :  { %v84_v33 = vrot.slane %v83_v31, 2 }
 0x115   :  { %v128_v35 = vrot.slane %v127_v32, 2 }
 0x116   :  { %v85_v34 = vadd.f32 %v84_v33, %v83_v31 }
 0x117   :  { %v129_v39 = vadd.f32 %v128_v35, %v127_v32 }
 0x118   :  { %v86_v36 = vrot.slane %v85_v34, 1 }
 0x119   :  { %v130_v41 = vrot.slane %v129_v39, 1 }
 0x11a   :  { %v87_v38 = vadd.f32 %v86_v36, %v85_v34 }
 0x11b   :  { %v131_v42 = vadd.f32 %v130_v41, %v129_v39 }
 0x11c   :  { %v89_v40 = vadd.f32 %v88_v37, %v87_v38 }
 0x11e   :  { %91 = vst.msk [vmem:[%s270_s4] sm:$0x1] %vm90_vm2, %v89_v40 }
 0x125   :  { %v132_v43 = vld [vmem:[%s270_s4] sm:$0x1] }
 0x126   :  { %v133_v44 = vadd.f32 %v132_v43, %v131_v42 }
 0x128   :  { %135 = vst.msk [vmem:[%s270_s4] sm:$0x1] %vm134_vm3, %v133_v44 }
 0x12f   :  { %v139_v45 = vld [vmem:[%s270_s4] sm:$0x1] }
 0x130   :  { %v140_v46 = vmul.f32 0.0625, %v139_v45 }
 0x132   :  { %v142_v47 = vsel %vm22_vm1, %v140_v46, -inf }
 0x133   :  { %143 = vmax.xlane.f32.xlu2 %v142_v47 }
 0x1a6   :  { %v144_v48 = vpop.xlane.xlu2 %143 }
 0x1a7   :  { %v145_v49 = vsub.f32 %v140_v46, %v144_v48 }
 0x1a9   :  { %v146_v50 = vmul.f32 1.442695, %v145_v49 }
 0x1ab   :  { %193 = vpow2.f32 %v146_v50 }
 0x1b1   :  { %v194_v51 = vpop.eup %193 }
 0x1b2   :  { %v148_v52 = vsel %vm22_vm1, %v194_v51, 0.0 }
 0x1b3   :  { %149 = vadd.xlane.f32.xlu2 %v148_v52 }
 0x226   :  { %v150_v53 = vpop.xlane.xlu2 %149 }
 0x227   :  { %195 = vrcp.f32 %v150_v53 }
 0x22d   :  { %v196_v54 = vpop.eup %195 }
 0x22e   :  { %v152_v55 = vmul.f32 %v196_v54, %v194_v51 }
 0x230   :  { %153 = vst.msk [vmem:[%s270_s4] sm:$0x1] %vm22_vm1, %v152_v55 }

// kernel: han_forward.5
= control target key start
LH: loop header
LB: loop body
LE: loop exit
PB: predicated region body
PF: predicated region fallthrough
CT: control target
= control target key end

     0   :  { %s982_s18 = smov 0   ;;  %s984_s19 = smov 0   ;;  %s1057_s0 = inlined_call_operand.vmem [shape: bf16[2,16,32], index: 0, kind: input, shape index: {}, may-alias: {0,1}]   ;;  %s1058_s1 = inlined_call_operand.vmem [shape: bf16[2,16,32], index: 1, kind: input, shape index: {}, may-alias: {0,1}]   ;;  %s1059_s2 = inlined_call_operand.vmem [shape: bf16[2,32,1], index: 2, kind: input, shape index: {}]   ;;  %s1060_s3 = inlined_call_operand.vmem [shape: bf16[2,32,1], index: 3, kind: input, shape index: {}]   ;;  %s1061_s4 = inlined_call_operand.vmem [shape: s8[2,16,16], index: 4, kind: input, shape index: {}]   ;;  %s1062_s5 = inlined_call_operand.vmem [shape: bf16[2,16,32], index: 5, kind: output, shape index: {}]  }
   0x1   :  { %s986_s20 = smov 0  }
   0x2 LB: > { %s34_s21 = sadd.s32 1, %s943_s19  ;;  %p823_p0 = scmp.ge.s32.totalorder %s947_s20, 1  ;;  %s947_s20 = sphi %s986_s20, %s15_s20   ;;  %s943_s19 = sphi %s984_s19, %s1064_s19   ;;  %s939_s18 = sphi %s982_s18, %s1063_s18  }
   0x3   : > { %p36_p1 = scmp.ge.s32.totalorder %s34_s21, 2  ;;  %p274_p2 = scmp.lt.s32.totalorder %s947_s20, 3 }
   0x5   : > { %s1066_s21 = smov (%p36_p1, %s34_s21), 0  ;;  %p275_p3 = pnand %p823_p0, %p274_p2 }
   0x6   : > { %p342_p4 = scmp.lt.s32.totalorder (!%p275_p3), %s939_s18, 1 }
   0x7   : > { %278 = sbr.rel (%p275_p3) target bundleno = 822 (0x336), region = 40 }
   0xc   : > { %vm406_vm0 = vcmask 261120   ;;  %v949_v0 = vmov 0.0   ;;  %s1068_s18 = smov (!%p342_p4, %s939_s18), 1  ;;  %v950_v9 = vmov 0   ;;  %vm401_vm1 = vcmask 7168  }
   0xd   : > { %407 = vst.msk [vmem:[#allocation4] sm:$0xff] %vm406_vm0, %v949_v0  ;;  %s869_s22 = sshll.u32 %s1068_s18, 4  ;;  %s1006_s23 = sshll.u32 %s1068_s18, 3  ;;  %906 = vset.pattern.permute.xlu1 %v950_v9  ;;  %907 = vset.pattern.permute.xlu2 %v950_v9  ;;  %v951_v12 = vmov -1e+09   ;;  %vm541_vm6 = vcmask 130048  }
   0xe   : > { %408 = vst.msk [vmem:[#allocation4 + $0x8] sm:$0xff] %vm406_vm0, %v949_v0  ;;  %s370_s26 = scalar_lea.vmem %s1060_s3, %s869_s22  ;;  %s365_s29 = scalar_lea.vmem %s1059_s2, %s869_s22  ;;  %vm663_vm10 = vcmask 257024  }
   0xf   : > { %v877_v1 = vld [vmem:[%s370_s26] sm:$0xff]  ;;  %v876_v2 = vld [vmem:[%s365_s29 + $0x8] sm:$0xff]  ;;  %s359_s7 = scalar_lea.vmem %s1058_s1, %s1006_s23  ;;  %s349_s10 = scalar_lea.vmem %s1057_s0, %s1006_s23  ;;  %402 = vst.msk [vmem:[#allocation2] sm:$0xff] %vm401_vm1, %v951_v12 }
  0x10   : > { %472 = vxpose.xlu0.c.b16.start [1/2] (short) (narrow) %v877_v1, 16  ;;  %452 = vmatpush.bf16.msra.mxu0 %v876_v2  ;;  %v875_v3 = vld [vmem:[%s365_s29] sm:$0xff]  ;;  %v878_v7 = vld [vmem:[%s370_s26 + $0x8] sm:$0xff]  ;;  %s871_s11 = sshll.u32 %s1068_s18, 2  ;;  %403 = vst.msk [vmem:[#allocation2 + $0x8] sm:$0xff] %vm401_vm1, %v951_v12  ;;  %s392_s17 = scalar_lea.vmem %s1062_s5, %s1006_s23 }
  0x11   : > { %v874_v4 = vld [vmem:[%s359_s7] sm:$0xff]  ;;  %s382_s14 = scalar_lea.vmem %s1061_s4, %s871_s11  ;;  %404 = vst.msk [vmem:[#allocation3] sm:$0xff] %vm401_vm1, %v949_v0 }
  0x12   : > { %v497_v5 = vsel %vm406_vm0, %v874_v4, 0  ;;  %613 = vmatpush.bf16.msra.mxu2 %v874_v4  ;;  %v873_v6 = vld [vmem:[%s349_s10] sm:$0xff]  ;;  %405 = vst.msk [vmem:[#allocation3 + $0x8] sm:$0xff] %vm401_vm1, %v949_v0 }
  0x13   : > { %506 = vmatpush.bf16.xpose.msra.mxu1 %v497_v5  ;;  %v421_v14 = vld [vmem:[%s382_s14] sm:$0x3]  ;;  %v422_v16 = vld [vmem:[%s382_s14 + $0x2] sm:$0x3] }
  0x14   : > { %453 = vmatpush.bf16.msra.mxu0 %v875_v3  ;;  %vm423_vm2 = vnez %v421_v14  ;;  %vm424_vm3 = vnez %v422_v16  ;;  %v587_v4 = vld [vmem:[#allocation4] sm:$0xff] }
  0x15   : > { %v531_v15 = vsel %vm423_vm2, 16843009, %v950_v9  ;;  %v532_v23 = vsel %vm424_vm3, 16843009, %v950_v9 }
  0x16   : > { %v533_v20 = vunpack.c.0.s8 %v531_v15  ;;  %v534_v27 = vunpack.c.0.s8 %v532_v23  ;;  %v539_v34 = vld [vmem:[#allocation2] sm:$0xff] }
  0x17   : > { %848 = vmatmul.msk.bf16.vlgmr.msra.gmra.mxu0 %vm406_vm0, %v873_v6  ;;  %v540_v38 = vld [vmem:[#allocation2 + $0x8] sm:$0xff] }
  0x18   : > { %vm535_vm5 = vcmp.ne.s32.totalorder %v533_v20, 0  ;;  %vm536_vm8 = vcmp.ne.s32.totalorder %v534_v27, 0  ;;  %v572_v61 = vld [vmem:[#allocation3] sm:$0xff] }
  0x19   : > { %v573_v57 = vld [vmem:[#allocation3 + $0x8] sm:$0xff] }
  0x20   : > { %473 = vxpose.xlu0.c.b16.end [2/2] (short) (narrow) %v878_v7, 16 }
  0x87   : > { %908 = vset.pattern.permute.xlu0 %v950_v9 }
  0x94   : > { %v455_v8 = vpop.f32.mrf.mxu0 }
  0x95   : > { %514 = vperm.xlu1 %906, %v455_v8  }
  0x9c   : > { %v457_v10 = vpop.f32.mrf.mxu0 }
  0x9d   : > { %519 = vperm.xlu1 %906, %v457_v10  }
  0xbc   : > { %v480_v11 = vpop.trf.xlu0 }
  0xbd   : > { %861 = vmatmul.msk.bf16.vlgmr.msra.gmra.mxu1 %vm406_vm0, %v480_v11  ;;  %v588_v11 = vld [vmem:[#allocation4 + $0x8] sm:$0xff] }
 0x107   : > { %v515_v13 = vpop.permute.xlu1 %514 }
 0x10f   : > { %v520_v18 = vpop.permute.xlu1 %519 }
 0x13a   : > { %v508_v17 = vpop.f32.mrf.mxu1 }
 0x13b   : > { %v522_v19 = vperm.slane %v508_v17, 0 }
 0x13d   : > { %v523_v21 = vadd.f32 %v522_v19, %v515_v13  ;;  %v524_v22 = vadd.f32 %v522_v19, %v520_v18 }
 0x13f   : > { %vm525_vm4 = vcmp.gt.f32.partialorder %v523_v21, 0.0  ;;  %v527_v24 = vmul.f32 0.2, %v523_v21  ;;  %v528_v25 = vmul.f32 0.2, %v524_v22  ;;  %vm526_vm7 = vcmp.gt.f32.partialorder %v524_v22, 0.0 }
 0x141   : > { %v529_v26 = vsel %vm525_vm4, %v523_v21, %v527_v24  ;;  %v530_v31 = vsel %vm526_vm7, %v524_v22, %v528_v25 }
 0x142   : > { %v510_v28 = vpop.f32.mrf.mxu1  ;;  %v537_v29 = vsel %vm535_vm5, %v529_v26, -1e+09  ;;  %v538_v32 = vsel %vm536_vm8, %v530_v31, -1e+09 }
 0x143   : > { %v542_v30 = vsel %vm541_vm6, %v537_v29, -inf  ;;  %v545_v33 = vsel %vm541_vm6, %v538_v32, -inf }
 0x144   : > { %543 = vmax.xlane.f32.xlu2 %v542_v30 }
 0x14c   : > { %546 = vmax.xlane.f32.xlu2 %v545_v33 }
 0x1b7   : > { %v544_v35 = vpop.xlane.xlu2 %543 }
 0x1b8   : > { %v548_v36 = vmax.f32 %v539_v34, %v544_v35 }
 0x1ba   : > { %624 = vst.msk [vmem:[#allocation2] sm:$0xff] %vm401_vm1, %v548_v36  ;;  %558 = vperm.xlu1 %906, %v548_v36   ;;  %v550_v37 = vsub.f32 %v539_v34, %v548_v36 }
 0x1bc   : > { %v552_v39 = vmul.f32 1.442695, %v550_v37 }
 0x1be   : > { %909 = vpow2.f32 %v552_v39 }
 0x1bf   : > { %v547_v40 = vpop.xlane.xlu2 %546 }
 0x1c0   : > { %v549_v41 = vmax.f32 %v540_v38, %v547_v40 }
 0x1c2   : > { %625 = vst.msk [vmem:[#allocation2 + $0x8] sm:$0xff] %vm401_vm1, %v549_v41  ;;  %563 = vperm.xlu2 %907, %v549_v41   ;;  %v551_v42 = vsub.f32 %v540_v38, %v549_v41 }
 0x1c4   : > { %v554_v43 = vmul.f32 1.442695, %v551_v42  ;;  %v910_v44 = vpop.eup %909 }
 0x1c5   : > { %v574_v62 = vmul.f32 %v910_v44, %v572_v61 }
 0x1c6   : > { %911 = vpow2.f32 %v554_v43 }
 0x1ca   : > { %591 = vperm.xlu2 %907, %v910_v44  }
 0x1cc   : > { %v912_v45 = vpop.eup %911 }
 0x1cd   : > { %v575_v58 = vmul.f32 %v912_v45, %v573_v57 }
 0x1d2   : > { %596 = vperm.xlu2 %907, %v912_v45  }
 0x21c   : > { %v564_v46 = vpop.permute.xlu2 %563 }
 0x21d   : > { %v567_v47 = vsub.f32 %v538_v32, %v564_v46 }
 0x21f   : > { %v570_v48 = vmul.f32 1.442695, %v567_v47 }
 0x221   : > { %913 = vpow2.f32 %v570_v48 }
 0x224   : > { %v592_v2 = vpop.permute.xlu2 %591 }
 0x225   : > { %v599_v6 = vmul.f32 %v592_v2, %v587_v4 }
 0x227   : > { %v914_v49 = vpop.eup %913 }
 0x228   : > { %v579_v50 = vsel %vm541_vm6, %v914_v49, 0.0 }
 0x229   : > { %580 = vadd.xlane.f32.xlu1 %v579_v50 }
 0x22c   : > { %v559_v51 = vpop.permute.xlu1 %558  ;;  %v597_v12 = vpop.permute.xlu2 %596 }
 0x22d   : > { %v566_v52 = vsub.f32 %v537_v29, %v559_v51  ;;  %v600_v13 = vmul.f32 %v597_v12, %v588_v11 }
 0x22f   : > { %v568_v53 = vmul.f32 1.442695, %v566_v52 }
 0x231   : > { %915 = vpow2.f32 %v568_v53 }
 0x237   : > { %v916_v54 = vpop.eup %915 }
 0x238   : > { %v576_v55 = vsel %vm541_vm6, %v916_v54, 0.0  ;;  %v601_v56 = vpack.c.bf16 %v914_v49, %v916_v54 }
 0x239   : > { %577 = vadd.xlane.f32.xlu0 %v576_v55 }
 0x23a   : > { %862 = vmatmul.msk.bf16.vlgmr.msra.gmra.mxu2 %vm541_vm6, %v601_v56 }
 0x29c   : > { %v581_v59 = vpop.xlane.xlu1 %580 }
 0x29d   : > { %v583_v60 = vadd.f32 %v581_v59, %v575_v58 }
 0x29f   : > { %586 = vst.msk [vmem:[#allocation3 + $0x8] sm:$0xff] %vm401_vm1, %v583_v60 }
 0x2a6   : > { %v630_v5 = vld [vmem:[#allocation3 + $0x8] sm:$0xff] }
 0x2a7   : > { %v632_v8 = vmax.f32 %v630_v5, 1e-30 }
 0x2ac   : > { %v578_v63 = vpop.xlane.xlu0 %577 }
 0x2ad   : > { %v582_v0 = vadd.f32 %v578_v63, %v574_v62 }
 0x2af   : > { %585 = vst.msk [vmem:[#allocation3] sm:$0xff] %vm401_vm1, %v582_v0 }
 0x2b6   : > { %v629_v1 = vld [vmem:[#allocation3] sm:$0xff] }
 0x2b7   : > { %v631_v3 = vmax.f32 %v629_v1, 1e-30 }
 0x2b9   : > { %917 = vrcp.f32 %v631_v3 }
 0x2ba   : > { %919 = vrcp.f32 %v632_v8 }
 0x2bd   : > { %v615_v7 = vpop.f32.mrf.mxu2 }
 0x2be   : > { %v620_v9 = vadd.f32 %v615_v7, %v599_v6 }
 0x2bf   : > { %v918_v10 = vpop.eup %917 }
 0x2c0   : > { %622 = vst.msk [vmem:[#allocation4] sm:$0xff] %vm406_vm0, %v620_v9  ;;  %639 = vperm.xlu2 %907, %v918_v10   ;;  %v920_v16 = vpop.eup %919 }
 0x2c5   : > { %v617_v14 = vpop.f32.mrf.mxu2 }
 0x2c6   : > { %v621_v15 = vadd.f32 %v617_v14, %v600_v13 }
 0x2c7   : > { %v635_v17 = vld [vmem:[#allocation4] sm:$0xff] }
 0x2c8   : > { %623 = vst.msk [vmem:[#allocation4 + $0x8] sm:$0xff] %vm406_vm0, %v621_v15  ;;  %644 = vperm.xlu2 %907, %v920_v16  }
 0x2cf   : > { %v636_v22 = vld [vmem:[#allocation4 + $0x8] sm:$0xff] }
 0x31a   : > { %v640_v18 = vpop.permute.xlu2 %639 }
 0x31b   : > { %v647_v19 = vmul.f32 %v640_v18, %v635_v17 }
 0x31d   : > { %v651_v20 = vmin.f32 %v647_v19, 0.0  ;;  %vm649_vm9 = vcmp.gt.f32.partialorder %v647_v19, 0.0 }
 0x31f   : > { %v653_v21 = vmul.f32 1.442695, %v651_v20 }
 0x321   : > { %921 = vpow2.f32 %v653_v21 }
 0x322   : > { %v645_v23 = vpop.permute.xlu2 %644 }
 0x323   : > { %v648_v24 = vmul.f32 %v645_v23, %v636_v22 }
 0x325   : > { %v652_v25 = vmin.f32 %v648_v24, 0.0  ;;  %vm650_vm11 = vcmp.gt.f32.partialorder %v648_v24, 0.0 }
 0x327   : > { %v922_v26 = vpop.eup %921  ;;  %v655_v27 = vmul.f32 1.442695, %v652_v25 }
 0x328   : > { %v863_v28 = vadd.f32 -1.0, %v922_v26 }
 0x329   : > { %923 = vpow2.f32 %v655_v27 }
 0x32a   : > { %v659_v29 = vsel %vm649_vm9, %v647_v19, %v863_v28 }
 0x32b   : > { %v661_v30 = vpack.c.bf16 %v659_v29, %v659_v29 }
 0x32d   : > { %664 = vst.msk [vmem:[%s392_s17] sm:$0xf] %vm663_vm10, %v661_v30 }
 0x32f   : > { %v924_v31 = vpop.eup %923 }
 0x330   : > { %v864_v32 = vadd.f32 -1.0, %v924_v31 }
 0x332   : > { %v660_v33 = vsel %vm650_vm11, %v648_v24, %v864_v32 }
 0x333   : > { %v662_v34 = vpack.c.bf16 %v660_v33, %v660_v33 }
 0x335   : > { %665 = vst.msk [vmem:[%s392_s17 + $0x4] sm:$0xf] %vm663_vm10, %v662_v34 }
 0x336 PF: > { %s15_s20 = sadd.s32 1, %s947_s20   ;;  %s1063_s18 = smov %s943_s19 }
 0x337   : > { %p12_p5 = scmp.ge.s32.totalorder %s15_s20, 4   ;;  %s1064_s19 = smov %s1066_s21 }
 0x339   :  { %14 = sbr.rel (!%p12_p5) target bundleno = 2 (0x2), region = 90 }

// kernel: han_forward.7
= control target key start
LH: loop header
LB: loop body
LE: loop exit
PB: predicated region body
PF: predicated region fallthrough
CT: control target
= control target key end

     0   :  { %v104_v1 = vmov 0   ;;  %s136_s0 = inlined_call_operand.vmem [shape: f32[1,2], index: 0, kind: input, shape index: {}]   ;;  %s137_s1 = inlined_call_operand.vmem [shape: bf16[2,16,32], index: 1, kind: input, shape index: {}]   ;;  %s138_s2 = inlined_call_operand.hbm [shape: f32[16,32], index: 2, kind: output, shape index: {}]  }
   0x1   :  { %v77_v0 = vld [vmem:[%s136_s0] ss:$0 sm:$0xff]  ;;  %75 = vset.pattern.permute.xlu0 %v104_v1 }
   0x2   :  { %7 = vsyncpa [#allocation3], 0  ;;  %20 = vperm.xlu0 %75, %v77_v0   ;;  %v105_v2 = vmov 1   ;;  %v62_v4 = vld [vmem:[%s137_s1] sm:$0xff]   ;;  %v69_v5 = vld [vmem:[%s137_s1 + $0x8] sm:$0xff]   ;;  %s106_s0 = smov [#allocation2]  }
   0x3   :  { %v63_v6 = vunpack.c.l.bf16 %v62_v4  ;;  %v64_v7 = vunpack.c.h.bf16 %v62_v4  ;;  %v67_v8 = vunpack.c.l.bf16 %v69_v5  ;;  %v68_v9 = vunpack.c.h.bf16 %v69_v5  ;;  %s45_s15 = sshll.u32 %s106_s0, 4  ;;  %s47_s18 = sshll.u32 %s138_s2, 4  ;;  %s46_s15 = int_to_ptr.vmem [resolvable:$true] %s45_s15  ;;  %s48_s18 = int_to_ptr.hbm [resolvable:$true] %s47_s18 }
   0x4   :  { %vm38_vm0 = vcmask 261120   ;;  %s107_s1 = smov 128   ;;  %s108_s19 = smov 8  }
   0xa   :  { %76 = vset.pattern.permute.xlu0 %v105_v2 }
   0xb   :  { %31 = vperm.xlu0 %76, %v77_v0  }
  0x74   :  { %v21_v3 = vpop.permute.xlu0 %20 }
  0x75   :  { %v23_v11 = vmul.f32 %v63_v6, %v21_v3  ;;  %v24_v12 = vmul.f32 %v64_v7, %v21_v3 }
  0x7d   :  { %v32_v10 = vpop.permute.xlu0 %31 }
  0x7e   :  { %v34_v13 = vmul.f32 %v67_v8, %v32_v10  ;;  %v35_v14 = vmul.f32 %v68_v9, %v32_v10 }
  0x80   :  { %v36_v15 = vadd.f32 %v34_v13, %v23_v11  ;;  %v37_v16 = vadd.f32 %v35_v14, %v24_v12 }
  0x82   :  { %39 = vst.msk [vmem:[#allocation2] sm:$0xff] %vm38_vm0, %v36_v15 }
  0x83   :  { %40 = vst.msk [vmem:[#allocation2 + $0x8] sm:$0xff] %vm38_vm0, %v37_v16 }
  0x84   :  { %53 = dma.vmem_to_hbm [thread:$0]  %s46_s15, 256, %s48_s18, [#allocation3], %s107_s1, %s107_s1, %s108_s19  }
  0x85   :  { %102 = dma.done.wait [#allocation3], 256  }
  0x86   :  { %103 = vsyncadd [#allocation3], 4294967040 }
  0x87   :  { %58 = vsyncpa [#allocation3], 1 }

</bundles_post_ra>
